<compile_context>
chip_gen: v6e
topology: v6e:2x2x1
jax: 0.10.0
libtpu: 0.0.40
codegen_flags: <defaults>
</compile_context>

<pallas_src>
import functools
import math

import jax
import jax.numpy as jnp
from jax.experimental import pallas as pl
from jax.experimental.pallas import tpu as pltpu

# ----------------------------------------------------------------------------
# Deterministic "parameters" of the augmentation pipeline.
# ----------------------------------------------------------------------------
_MEAN_RGB = (0.485, 0.456, 0.406)      # Normalize mean (per channel, RGB)
_STD_RGB = (0.229, 0.224, 0.225)       # Normalize std  (per channel, RGB)


def _gaussian_kernel1d(ksize: int = 3, sigma: float = 1.0):
    """Same construction as kornia.filters.get_gaussian_kernel1d."""
    half = (ksize - 1) / 2.0
    g = [math.exp(-((i - half) ** 2) / (2.0 * sigma * sigma)) for i in range(ksize)]
    s = sum(g)
    return tuple(v / s for v in g)


_G1D = _gaussian_kernel1d(3, 1.0)                       # symmetric: (g0, g1, g0)
_BLUR_K = [[_G1D[i] * _G1D[j] for j in range(3)] for i in range(3)]  # reference only


# ----------------------------------------------------------------------------
# Pallas kernel: fused Normalize + 3x3 reflect Gaussian blur on a frame batch.
# Block layout: [frames_per_block, C*H*W]; each sublane row is one frame,
# flattened row-major (C, H, W) along the lane axis.  All per-frame work is
# row-independent, so ragged (partially out-of-bounds) tail blocks are safe:
# garbage rows are computed but their writes are masked out by Pallas.
# ----------------------------------------------------------------------------
def _aug_kernel(x_ref, o_ref, *, channels, height, width, mean, inv_std):
    fb = x_ref.shape[0]
    hw = height * width
    g0, g1 = _G1D[0], _G1D[1]

    # Column-within-image-row index (hoisted out of the channel loop).
    idx = jax.lax.broadcasted_iota(jnp.int32, (fb, hw), 1)
    col = idx % width
    is_first_col = col == 0
    is_last_col = col == (width - 1)

    for c in range(channels):
        # Static, lane-aligned slice of the current channel (no copy for the
        # common case where H*W is a multiple of 128).
        xc = x_ref[:, c * hw:(c + 1) * hw].astype(jnp.float32)       # (fb, hw)

        # Vertical 1-D pass: pixel above / below with edge-excluding
        # ("reflect") behavior at the first / last image row, built directly
        # by concatenating shifted lane slices.
        up = jnp.concatenate(
            [xc[:, width:2 * width], xc[:, :hw - width]], axis=1)     # x[r-1]
        down = jnp.concatenate(
            [xc[:, width:], xc[:, hw - 2 * width:hw - width]], axis=1)  # x[r+1]
        v = g1 * xc + g0 * (up + down)

        # Horizontal 1-D pass: shift by +-1 lane, then fix up every image-row
        # boundary (reflect) with the column masks.
        sl = jnp.concatenate([v[:, 1:2], v[:, :hw - 1]], axis=1)       # v[j-1]
        sr = jnp.concatenate([v[:, 1:], v[:, hw - 2:hw - 1]], axis=1)   # v[j+1]
        left = jnp.where(is_first_col, sr, sl)
        right = jnp.where(is_last_col, sl, sr)

        # Normalize folded through the unit-sum blur:
        #   blur((x - m) / s) == blur(x) / s - m / s
        # and the 1/s scale folded straight into the horizontal filter taps.
        s = inv_std[c]
        out_c = (g1 * s) * v + (g0 * s) * (left + right) - (mean[c] * s)
        o_ref[:, c * hw:(c + 1) * hw] = out_c.astype(o_ref.dtype)


# ----------------------------------------------------------------------------
# Block-size selection.
# ----------------------------------------------------------------------------
def _frames_per_block(n_frames: int, frame_bytes: int,
                      budget_bytes: int = 2 << 20) -> int:
    """Largest multiple-of-8 frame count whose block fits the VMEM budget.

    TPU sublane rule: the second-to-last block dim must be a multiple of 8 or
    equal the full array dim.  A divisor of ``n_frames`` is NOT required: the
    grid uses pl.cdiv and the last (ragged) block is masked by Pallas.
    """
    if n_frames <= 8:
        return n_frames
    cap = max(8, (budget_bytes // max(frame_bytes, 1)) // 8 * 8)
    return max(8, min(cap, (n_frames // 8) * 8))


# ----------------------------------------------------------------------------
# Wrapper reproducing KorniaAugmentations.forward semantics.
# ----------------------------------------------------------------------------
def kornia_augmentations(images: jax.Array, stack_n_channels: int = 3,
                         frames_per_block: int | None = None) -> jax.Array:
    """Apply the (fixed) augmentation pipeline to a stacked-frame image batch."""
    if images.ndim != 4 or not jnp.issubdtype(images.dtype, jnp.floating):
        raise ValueError(
            f"Images of shape '{images.shape}' and type '{images.dtype}' do not "
            "have rank 4 and floating point type"
        )
    orig_shape = images.shape
    N, C_total, H, W = orig_shape

    stacked_frames = C_total // stack_n_channels
    if stacked_frames < 1:
        raise ValueError(
            f"No input frames in tensor of shape '{images.shape}' "
            f"(channels per frame: {stack_n_channels})"
        )
    if stacked_frames * stack_n_channels != C_total:
        raise ValueError(
            f"Image tensor shape '{images.shape}' not divisible by channels per "
            f"frame ({stack_n_channels})"
        )
    if H < 2 or W < 2:
        raise ValueError("Reflect padding requires H >= 2 and W >= 2")

    C = stack_n_channels
    if C == 3:
        mean, std = _MEAN_RGB, _STD_RGB
    else:
        mean, std = (0.5,) * C, (0.5,) * C
    inv_std = tuple(1.0 / s for s in std)

    n_frames = N * stacked_frames
    chw = C * H * W

    # [N, C*F, H, W] -> [N*F, C*H*W]  (free reshape; same grouping as the
    # PyTorch .view into [N*F, C, H, W], then flattened lane-dense).
    x2d = images.reshape((n_frames, chw))

    fb = frames_per_block
    if fb is None:
        fb = _frames_per_block(n_frames, chw * images.dtype.itemsize)
    if fb != n_frames and fb % 8 != 0:
        raise ValueError(f"frames_per_block={fb} must be a multiple of 8 or "
                         f"equal to the total frame count {n_frames}")

    kernel = functools.partial(
        _aug_kernel, channels=C, height=H, width=W, mean=mean, inv_std=inv_std)

    out = pl.pallas_call(
        kernel,
        out_shape=jax.ShapeDtypeStruct((n_frames, chw), images.dtype),
        grid=(pl.cdiv(n_frames, fb),),
        in_specs=[pl.BlockSpec((fb, chw), lambda b: (b, 0))],
        out_specs=pl.BlockSpec((fb, chw), lambda b: (b, 0)),
        compiler_params=pltpu.CompilerParams(dimension_semantics=("parallel",)),
    )(x2d)

    # [N*F, C*H*W] -> [N, C*F, H, W]
    return out.reshape(orig_shape)


# ----------------------------------------------------------------------------
# Pure-JAX reference (mirrors the module: normalize, then 3x3 reflect blur).
# ----------------------------------------------------------------------------
def _reference(images: jax.Array, stack_n_channels: int = 3) -> jax.Array:
    N, C_total, H, W = images.shape
    F = C_total // stack_n_channels
    C = stack_n_channels
    if C == 3:
        mean_t, std_t = _MEAN_RGB, _STD_RGB
    else:
        mean_t, std_t = (0.5,) * C, (0.5,) * C
    x = images.reshape((N * F, C, H, W)).astype(jnp.float32)
    mean = jnp.asarray(mean_t, jnp.float32)[None, :, None, None]
    std = jnp.asarray(std_t, jnp.float32)[None, :, None, None]
    xn = (x - mean) / std
    xp = jnp.pad(xn, ((0, 0), (0, 0), (1, 1), (1, 1)), mode="reflect")
    acc = sum(_BLUR_K[di][dj] * xp[:, :, di:di + H, dj:dj + W]
              for di in range(3) for dj in range(3))
    return acc.reshape(images.shape).astype(images.dtype)


if __name__ == "__main__":
    key = jax.random.PRNGKey(0)
    k1, k2, k3, k4 = jax.random.split(key, 4)

    cases = [
        # (key, shape [N, 3*F, H, W], forced frames_per_block)
        (k1, (2, 6, 16, 16), None),    # 4 frames total -> single full-dim block
        (k2, (4, 12, 16, 16), None),   # 16 frames, auto block = 16 (1 step)
        (k3, (4, 12, 16, 16), 8),      # force 8 frames/block -> 2 grid steps
        (k4, (4, 9, 16, 16), None),    # 12 frames, auto block = 8 -> ragged tail
    ]

    for k, shape, fb in cases:
        imgs = jax.random.uniform(k, shape, dtype=jnp.float32)
        out = jax.block_until_ready(
            kornia_augmentations(imgs, frames_per_block=fb))
        ref = _reference(imgs)
        assert out.shape == imgs.shape
        assert out.dtype == imgs.dtype
        err = float(jnp.max(jnp.abs(out - ref)))
        assert err < 1e-4, f"max abs err {err} for shape {shape}, fb={fb}"

    print("KERNEL_OK")
</pallas_src>

<mosaic_0001>
module attributes {stable_mosaic.version = 11 : i64} {
  func.func @_aug_kernel(%arg0: i32, %arg1: memref<4x768xf32, #tpu.memory_space<vmem>>, %arg2: memref<4x768xf32, #tpu.memory_space<vmem>>) attributes {dimension_semantics = [#tpu.dimension_semantics<parallel>], iteration_bounds = array<i64: 1>, scalar_prefetch = 0 : i64, scratch_operands = 0 : i64, tpu.core_type = #tpu.core_type<tc>, window_params = [{transform_indices = @transform_0, window_bounds = array<i64: 4, 768>}, {transform_indices = @transform_1, window_bounds = array<i64: 4, 768>}]} {
    %0 = tpu.iota {dimensions = array<i32: 1>} : vector<4x256xi32>
    %c16_i32 = arith.constant 16 : i32
    %c0_i32 = arith.constant 0 : i32
    %1 = arith.cmpi eq, %c16_i32, %c0_i32 : i32
    %c1_i32 = arith.constant 1 : i32
    %2 = arith.select %1, %c1_i32, %c16_i32 : i32
    %3 = vector.broadcast %2 : i32 to vector<4x256xi32>
    %4 = arith.remsi %0, %3 : vector<4x256xi32>
    %c0_i32_0 = arith.constant 0 : i32
    %5 = vector.broadcast %c0_i32_0 : i32 to vector<4x256xi32>
    %6 = arith.cmpi ne, %4, %5 : vector<4x256xi32>
    %c0_i32_1 = arith.constant 0 : i32
    %7 = vector.broadcast %c0_i32_1 : i32 to vector<4x256xi32>
    %8 = arith.cmpi slt, %4, %7 : vector<4x256xi32>
    %c0_i32_2 = arith.constant 0 : i32
    %9 = arith.cmpi slt, %2, %c0_i32_2 : i32
    %10 = vector.broadcast %9 : i1 to vector<4x256xi1>
    %11 = vector.broadcast %10 : vector<4x256xi1> to vector<4x256xi1>
    %12 = arith.xori %8, %11 : vector<4x256xi1>
    %13 = arith.andi %12, %6 : vector<4x256xi1>
    %14 = vector.broadcast %2 : i32 to vector<4x256xi32>
    %15 = arith.addi %4, %14 : vector<4x256xi32>
    %16 = arith.select %13, %15, %4 : vector<4x256xi1>, vector<4x256xi32>
    %c0_i32_3 = arith.constant 0 : i32
    %17 = vector.broadcast %c0_i32_3 : i32 to vector<4x256xi32>
    %18 = arith.cmpi eq, %16, %17 : vector<4x256xi32>
    %c15_i32 = arith.constant 15 : i32
    %19 = vector.broadcast %c15_i32 : i32 to vector<4x256xi32>
    %20 = arith.cmpi eq, %16, %19 : vector<4x256xi32>
    %c0 = arith.constant 0 : index
    %c0_4 = arith.constant 0 : index
    %21 = vector.load %arg1[%c0, %c0_4] : memref<4x768xf32, #tpu.memory_space<vmem>>, vector<4x256xf32>
    %22 = vector.extract_strided_slice %21 {offsets = [0, 16], sizes = [4, 16], strides = [1, 1]} : vector<4x256xf32> to vector<4x16xf32>
    %23 = vector.extract_strided_slice %21 {offsets = [0, 0], sizes = [4, 240], strides = [1, 1]} : vector<4x256xf32> to vector<4x240xf32>
    %24 = tpu.concatenate %22, %23 in 1 : vector<4x16xf32>, vector<4x240xf32> -> vector<4x256xf32>
    %25 = vector.extract_strided_slice %21 {offsets = [0, 16], sizes = [4, 240], strides = [1, 1]} : vector<4x256xf32> to vector<4x240xf32>
    %26 = vector.extract_strided_slice %21 {offsets = [0, 224], sizes = [4, 16], strides = [1, 1]} : vector<4x256xf32> to vector<4x16xf32>
    %27 = tpu.concatenate %25, %26 in 1 : vector<4x240xf32>, vector<4x16xf32> -> vector<4x256xf32>
    %cst = arith.constant 0.451862752 : f32
    %28 = vector.broadcast %cst : f32 to vector<4x256xf32>
    %29 = arith.mulf %28, %21 : vector<4x256xf32>
    %30 = arith.addf %24, %27 : vector<4x256xf32>
    %cst_5 = arith.constant 0.274068624 : f32
    %31 = vector.broadcast %cst_5 : f32 to vector<4x256xf32>
    %32 = arith.mulf %31, %30 : vector<4x256xf32>
    %33 = arith.addf %29, %32 : vector<4x256xf32>
    %34 = vector.extract_strided_slice %33 {offsets = [0, 1], sizes = [4, 1], strides = [1, 1]} : vector<4x256xf32> to vector<4x1xf32>
    %35 = vector.extract_strided_slice %33 {offsets = [0, 0], sizes = [4, 255], strides = [1, 1]} : vector<4x256xf32> to vector<4x255xf32>
    %36 = tpu.concatenate %34, %35 in 1 : vector<4x1xf32>, vector<4x255xf32> -> vector<4x256xf32>
    %37 = vector.extract_strided_slice %33 {offsets = [0, 1], sizes = [4, 255], strides = [1, 1]} : vector<4x256xf32> to vector<4x255xf32>
    %38 = vector.extract_strided_slice %33 {offsets = [0, 254], sizes = [4, 1], strides = [1, 1]} : vector<4x256xf32> to vector<4x1xf32>
    %39 = tpu.concatenate %37, %38 in 1 : vector<4x255xf32>, vector<4x1xf32> -> vector<4x256xf32>
    %40 = arith.select %18, %39, %36 : vector<4x256xi1>, vector<4x256xf32>
    %41 = arith.select %20, %36, %39 : vector<4x256xi1>, vector<4x256xf32>
    %cst_6 = arith.constant 1.97319984 : f32
    %42 = vector.broadcast %cst_6 : f32 to vector<4x256xf32>
    %43 = arith.mulf %42, %33 : vector<4x256xf32>
    %44 = arith.addf %40, %41 : vector<4x256xf32>
    %cst_7 = arith.constant 1.19680619 : f32
    %45 = vector.broadcast %cst_7 : f32 to vector<4x256xf32>
    %46 = arith.mulf %45, %44 : vector<4x256xf32>
    %47 = arith.addf %43, %46 : vector<4x256xf32>
    %cst_8 = arith.constant 2.11790395 : f32
    %48 = vector.broadcast %cst_8 : f32 to vector<4x256xf32>
    %49 = arith.subf %47, %48 : vector<4x256xf32>
    %c0_9 = arith.constant 0 : index
    %c0_10 = arith.constant 0 : index
    %50 = vector.load %arg2[%c0_9, %c0_10] : memref<4x768xf32, #tpu.memory_space<vmem>>, vector<4x256xf32>
    tpu.vector_store %arg2[%c0_9, %c0_10], %49 {strides = array<i32>} : memref<4x768xf32, #tpu.memory_space<vmem>>, vector<4x256xf32>,
    %c0_11 = arith.constant 0 : index
    %c256 = arith.constant 256 : index
    %51 = vector.load %arg1[%c0_11, %c256] : memref<4x768xf32, #tpu.memory_space<vmem>>, vector<4x256xf32>
    %52 = vector.extract_strided_slice %51 {offsets = [0, 16], sizes = [4, 16], strides = [1, 1]} : vector<4x256xf32> to vector<4x16xf32>
    %53 = vector.extract_strided_slice %51 {offsets = [0, 0], sizes = [4, 240], strides = [1, 1]} : vector<4x256xf32> to vector<4x240xf32>
    %54 = tpu.concatenate %52, %53 in 1 : vector<4x16xf32>, vector<4x240xf32> -> vector<4x256xf32>
    %55 = vector.extract_strided_slice %51 {offsets = [0, 16], sizes = [4, 240], strides = [1, 1]} : vector<4x256xf32> to vector<4x240xf32>
    %56 = vector.extract_strided_slice %51 {offsets = [0, 224], sizes = [4, 16], strides = [1, 1]} : vector<4x256xf32> to vector<4x16xf32>
    %57 = tpu.concatenate %55, %56 in 1 : vector<4x240xf32>, vector<4x16xf32> -> vector<4x256xf32>
    %cst_12 = arith.constant 0.451862752 : f32
    %58 = vector.broadcast %cst_12 : f32 to vector<4x256xf32>
    %59 = arith.mulf %58, %51 : vector<4x256xf32>
    %60 = arith.addf %54, %57 : vector<4x256xf32>
    %cst_13 = arith.constant 0.274068624 : f32
    %61 = vector.broadcast %cst_13 : f32 to vector<4x256xf32>
    %62 = arith.mulf %61, %60 : vector<4x256xf32>
    %63 = arith.addf %59, %62 : vector<4x256xf32>
    %64 = vector.extract_strided_slice %63 {offsets = [0, 1], sizes = [4, 1], strides = [1, 1]} : vector<4x256xf32> to vector<4x1xf32>
    %65 = vector.extract_strided_slice %63 {offsets = [0, 0], sizes = [4, 255], strides = [1, 1]} : vector<4x256xf32> to vector<4x255xf32>
    %66 = tpu.concatenate %64, %65 in 1 : vector<4x1xf32>, vector<4x255xf32> -> vector<4x256xf32>
    %67 = vector.extract_strided_slice %63 {offsets = [0, 1], sizes = [4, 255], strides = [1, 1]} : vector<4x256xf32> to vector<4x255xf32>
    %68 = vector.extract_strided_slice %63 {offsets = [0, 254], sizes = [4, 1], strides = [1, 1]} : vector<4x256xf32> to vector<4x1xf32>
    %69 = tpu.concatenate %67, %68 in 1 : vector<4x255xf32>, vector<4x1xf32> -> vector<4x256xf32>
    %70 = arith.select %18, %69, %66 : vector<4x256xi1>, vector<4x256xf32>
    %71 = arith.select %20, %66, %69 : vector<4x256xi1>, vector<4x256xf32>
    %cst_14 = arith.constant 2.01724458 : f32
    %72 = vector.broadcast %cst_14 : f32 to vector<4x256xf32>
    %73 = arith.mulf %72, %63 : vector<4x256xf32>
    %74 = arith.addf %70, %71 : vector<4x256xf32>
    %cst_15 = arith.constant 1.22352064 : f32
    %75 = vector.broadcast %cst_15 : f32 to vector<4x256xf32>
    %76 = arith.mulf %75, %74 : vector<4x256xf32>
    %77 = arith.addf %73, %76 : vector<4x256xf32>
    %cst_16 = arith.constant 2.03571439 : f32
    %78 = vector.broadcast %cst_16 : f32 to vector<4x256xf32>
    %79 = arith.subf %77, %78 : vector<4x256xf32>
    %c0_17 = arith.constant 0 : index
    %c256_18 = arith.constant 256 : index
    %80 = vector.load %arg2[%c0_17, %c256_18] : memref<4x768xf32, #tpu.memory_space<vmem>>, vector<4x256xf32>
    tpu.vector_store %arg2[%c0_17, %c256_18], %79 {strides = array<i32>} : memref<4x768xf32, #tpu.memory_space<vmem>>, vector<4x256xf32>,
    %c0_19 = arith.constant 0 : index
    %c512 = arith.constant 512 : index
    %81 = vector.load %arg1[%c0_19, %c512] : memref<4x768xf32, #tpu.memory_space<vmem>>, vector<4x256xf32>
    %82 = vector.extract_strided_slice %81 {offsets = [0, 16], sizes = [4, 16], strides = [1, 1]} : vector<4x256xf32> to vector<4x16xf32>
    %83 = vector.extract_strided_slice %81 {offsets = [0, 0], sizes = [4, 240], strides = [1, 1]} : vector<4x256xf32> to vector<4x240xf32>
    %84 = tpu.concatenate %82, %83 in 1 : vector<4x16xf32>, vector<4x240xf32> -> vector<4x256xf32>
    %85 = vector.extract_strided_slice %81 {offsets = [0, 16], sizes = [4, 240], strides = [1, 1]} : vector<4x256xf32> to vector<4x240xf32>
    %86 = vector.extract_strided_slice %81 {offsets = [0, 224], sizes = [4, 16], strides = [1, 1]} : vector<4x256xf32> to vector<4x16xf32>
    %87 = tpu.concatenate %85, %86 in 1 : vector<4x240xf32>, vector<4x16xf32> -> vector<4x256xf32>
    %cst_20 = arith.constant 0.451862752 : f32
    %88 = vector.broadcast %cst_20 : f32 to vector<4x256xf32>
    %89 = arith.mulf %88, %81 : vector<4x256xf32>
    %90 = arith.addf %84, %87 : vector<4x256xf32>
    %cst_21 = arith.constant 0.274068624 : f32
    %91 = vector.broadcast %cst_21 : f32 to vector<4x256xf32>
    %92 = arith.mulf %91, %90 : vector<4x256xf32>
    %93 = arith.addf %89, %92 : vector<4x256xf32>
    %94 = vector.extract_strided_slice %93 {offsets = [0, 1], sizes = [4, 1], strides = [1, 1]} : vector<4x256xf32> to vector<4x1xf32>
    %95 = vector.extract_strided_slice %93 {offsets = [0, 0], sizes = [4, 255], strides = [1, 1]} : vector<4x256xf32> to vector<4x255xf32>
    %96 = tpu.concatenate %94, %95 in 1 : vector<4x1xf32>, vector<4x255xf32> -> vector<4x256xf32>
    %97 = vector.extract_strided_slice %93 {offsets = [0, 1], sizes = [4, 255], strides = [1, 1]} : vector<4x256xf32> to vector<4x255xf32>
    %98 = vector.extract_strided_slice %93 {offsets = [0, 254], sizes = [4, 1], strides = [1, 1]} : vector<4x256xf32> to vector<4x1xf32>
    %99 = tpu.concatenate %97, %98 in 1 : vector<4x255xf32>, vector<4x1xf32> -> vector<4x256xf32>
    %100 = arith.select %18, %99, %96 : vector<4x256xi1>, vector<4x256xf32>
    %101 = arith.select %20, %96, %99 : vector<4x256xi1>, vector<4x256xf32>
    %cst_22 = arith.constant 2.00827885 : f32
    %102 = vector.broadcast %cst_22 : f32 to vector<4x256xf32>
    %103 = arith.mulf %102, %93 : vector<4x256xf32>
    %104 = arith.addf %100, %101 : vector<4x256xf32>
    %cst_23 = arith.constant 1.21808279 : f32
    %105 = vector.broadcast %cst_23 : f32 to vector<4x256xf32>
    %106 = arith.mulf %105, %104 : vector<4x256xf32>
    %107 = arith.addf %103, %106 : vector<4x256xf32>
    %cst_24 = arith.constant 1.80444443 : f32
    %108 = vector.broadcast %cst_24 : f32 to vector<4x256xf32>
    %109 = arith.subf %107, %108 : vector<4x256xf32>
    %c0_25 = arith.constant 0 : index
    %c512_26 = arith.constant 512 : index
    %110 = vector.load %arg2[%c0_25, %c512_26] : memref<4x768xf32, #tpu.memory_space<vmem>>, vector<4x256xf32>
    tpu.vector_store %arg2[%c0_25, %c512_26], %109 {strides = array<i32>} : memref<4x768xf32, #tpu.memory_space<vmem>>, vector<4x256xf32>,
    return
  }
  func.func @transform_0(%arg0: i32) -> (i32, i32) {
    %c0_i32 = arith.constant 0 : i32
    %c0_i32_0 = arith.constant 0 : i32
    return %arg0, %c0_i32 : i32, i32
  }
  func.func @transform_1(%arg0: i32) -> (i32, i32) {
    %c0_i32 = arith.constant 0 : i32
    %c0_i32_0 = arith.constant 0 : i32
    return %arg0, %c0_i32 : i32, i32
  }
}

</mosaic_0001>

<bundles_post_ra>
// kernel: tpu_custom_call.1
= control target key start
LH: loop header
LB: loop body
LE: loop exit
PB: predicated region body
PF: predicated region fallthrough
CT: control target
= control target key end

     0   :  { %6 = vsyncpa [#allocation3], 0  ;;  %s441_s0 = inlined_call_operand.hbm [shape: f32[4,768], index: 0, kind: input, shape index: {}]   ;;  %s442_s1 = inlined_call_operand.hbm [shape: f32[4,768], index: 1, kind: output, shape index: {}]  }
   0x1   :  { %7 = vsyncpa [#allocation4], 0  ;;  %s328_s6 = smov [#allocation2]  }
   0x2   :  { %s14_s7 = sshll.u32 %s328_s6, 4  ;;  %s15_s7 = int_to_ptr.vmem [resolvable:$true] %s14_s7 }
   0x3   :  { %s292_s8 = scalar_lea.vmem %s15_s7, 384  ;;  %p297_p1 = scmp.lt.s32.totalorder %s15_s7, %s15_s7 }
   0x4   :  { %p293_p0 = scmp.ne.s32.totalorder %s15_s7, %s292_s8  ;;  %p298_p2 = scmp.lt.s32.totalorder %s292_s8, %s292_s8 }
   0x6   :  { %p299_p3 = por %p298_p2, %p297_p1 }
   0x8   :  { %p300_p4 = pnand %p299_p3, %p293_p0 }
   0xa   :  { %303 = shalt.err (!%p300_p4)
}
   0xb   :  { %17 = dma.hbm_to_vmem [thread:$0]  %s441_s0, 384, %s15_s7, [#allocation3]  }
   0xc   :  { %324 = dma.done.wait [#allocation3], 384  }
   0xd   :  { %325 = vsyncadd [#allocation3], 4294966912  ;;  %v123_v0 = vld [vmem:[#allocation2 + $0x8] sm:$0xff]  ;;  %v52_v1 = vld [vmem:[#allocation2] sm:$0xff]  ;;  %s329_s11 = smov 16   ;;  %s330_s12 = smov 112   ;;  %v21_v54 = vlaneseq }
   0xe   :  { %129 = vrot.lane.b32.xlu1 %v123_v0, %s329_s11  ;;  %54 = vrot.lane.b32.xlu0 %v52_v1, %s330_s12  ;;  %v57_v2 = vcombine.high %v52_v1, %v52_v1  ;;  %v128_v3 = vcombine.high %v123_v0, %v123_v0  ;;  %v190_v4 = vld [vmem:[#allocation2 + $0x10] sm:$0xff]  ;;  %vm62_vm0 = vcmask 130048   ;;  %vm69_vm1 = vcmask 916480   ;;  %s331_s0 = smov 1   ;;  %s332_s13 = smov 127  }
   0xf   :  { %v195_v5 = vcombine.high %v190_v4, %v190_v4  ;;  %v75_v18 = vmul.f32 0.45186275, %v52_v1  ;;  %v144_v30 = vmul.f32 0.45186275, %v123_v0  ;;  %v211_v46 = vmul.f32 0.45186275, %v190_v4 }
  0x10   :  { %v22_v57 = vand.u32 127, %v21_v54  ;;  %vm94_vm2 = vcmask 7168   ;;  %vm101_vm3 = vcmask 1039360   ;;  %s333_s14 = smov [#allocation5]  }
  0x11   :  { %s263_s15 = sshll.u32 %s333_s14, 4  ;;  %s264_s15 = int_to_ptr.vmem [resolvable:$true] %s263_s15 }
  0x12   :  { %58 = vrot.lane.b32.xlu0 %v52_v1, %s329_s11  ;;  %60 = vrot.lane.b32.xlu1 %v57_v2, %s329_s11  ;;  %v23_v58 = vadd.s32 128, %v22_v57  ;;  %v28_v61 = vand.u32 15, %v22_v57  ;;  %s304_s16 = scalar_lea.vmem %s264_s15, 384  ;;  %p309_p6 = scmp.lt.s32.totalorder %s264_s15, %s264_s15 }
  0x13   :  { %p305_p5 = scmp.ne.s32.totalorder %s264_s15, %s304_s16  ;;  %p310_p7 = scmp.lt.s32.totalorder %s304_s16, %s304_s16 }
  0x14   :  { %v35_v62 = vand.u32 15, %v23_v58  ;;  %vm383_vm4 = vcmp.eq.s32.totalorder %v28_v61, 0  ;;  %vm391_vm6 = vcmp.eq.s32.totalorder %v28_v61, 15 }
  0x15   :  { %p311_p8 = por %p310_p7, %p309_p6 }
  0x16   :  { %125 = vrot.lane.b32.xlu0 %v123_v0, %s330_s12  ;;  %67 = vrot.lane.b32.xlu1 %v57_v2, %s330_s12  ;;  %vm387_vm5 = vcmp.eq.s32.totalorder %v35_v62, 0  ;;  %vm395_vm7 = vcmp.eq.s32.totalorder %v35_v62, 15 }
  0x17   :  { %p312_p9 = pnand %p311_p8, %p305_p5 }
  0x1a   :  { %131 = vrot.lane.b32.xlu0 %v128_v3, %s329_s11  ;;  %137 = vrot.lane.b32.xlu1 %v128_v3, %s330_s12 }
  0x1e   :  { %192 = vrot.lane.b32.xlu0 %v190_v4, %s330_s12  ;;  %196 = vrot.lane.b32.xlu1 %v190_v4, %s329_s11 }
  0x22   :  { %198 = vrot.lane.b32.xlu0 %v195_v5, %s329_s11  ;;  %204 = vrot.lane.b32.xlu1 %v195_v5, %s330_s12 }
  0x80   :  { %v130_v6 = vpop.permute.xlu1 %129  ;;  %v55_v7 = vpop.permute.xlu0 %54 }
  0x84   :  { %v59_v8 = vpop.permute.xlu0 %58  ;;  %v61_v9 = vpop.permute.xlu1 %60 }
  0x85   :  { %v66_v12 = vsel %vm62_vm0, %v55_v7, %v59_v8  ;;  %v63_v13 = vsel %vm62_vm0, %v59_v8, %v61_v9 }
  0x88   :  { %v126_v10 = vpop.permute.xlu0 %125  ;;  %v68_v11 = vpop.permute.xlu1 %67 }
  0x89   :  { %v70_v14 = vsel %vm69_vm1, %v55_v7, %v68_v11  ;;  %v74_v15 = vsel %vm69_vm1, %v68_v11, %v61_v9  ;;  %v136_v23 = vsel %vm62_vm0, %v126_v10, %v130_v6 }
  0x8a   :  { %v76_v16 = vadd.f32 %v70_v14, %v66_v12  ;;  %v77_v17 = vadd.f32 %v74_v15, %v63_v13 }
  0x8c   :  { %v78_v19 = vmul.f32 0.27406862, %v76_v16  ;;  %v79_v20 = vmul.f32 0.27406862, %v77_v17  ;;  %v132_v21 = vpop.permute.xlu0 %131  ;;  %v138_v22 = vpop.permute.xlu1 %137 }
  0x8d   :  { %v133_v24 = vsel %vm62_vm0, %v130_v6, %v132_v21  ;;  %v139_v25 = vsel %vm69_vm1, %v126_v10, %v138_v22  ;;  %v143_v26 = vsel %vm69_vm1, %v138_v22, %v132_v21 }
  0x8e   :  { %v82_v27 = vcombine.low %v78_v19, %v79_v20  ;;  %v145_v28 = vadd.f32 %v139_v25, %v136_v23  ;;  %v146_v29 = vadd.f32 %v143_v26, %v133_v24 }
  0x90   :  { %v355_v31 = vadd.f32 %v82_v27, %v75_v18  ;;  %v147_v32 = vmul.f32 0.27406862, %v145_v28  ;;  %v148_v33 = vmul.f32 0.27406862, %v146_v29  ;;  %v193_v34 = vpop.permute.xlu0 %192  ;;  %v197_v35 = vpop.permute.xlu1 %196 }
  0x91   :  { %v203_v40 = vsel %vm62_vm0, %v193_v34, %v197_v35 }
  0x92   :  { %v151_v36 = vcombine.low %v147_v32, %v148_v33  ;;  %90 = vrot.lane.b32.xlu1 %v355_v31, %s331_s0  ;;  %86 = vrot.lane.b32.xlu0 %v355_v31, %s332_s13  ;;  %v89_v51 = vcombine.high %v355_v31, %v355_v31 }
  0x94   :  { %v360_v37 = vadd.f32 %v151_v36, %v144_v30  ;;  %v199_v38 = vpop.permute.xlu0 %198  ;;  %v205_v39 = vpop.permute.xlu1 %204  ;;  %v111_v36 = vmul.f32 1.9731998, %v355_v31 }
  0x95   :  { %v200_v41 = vsel %vm62_vm0, %v197_v35, %v199_v38  ;;  %v206_v42 = vsel %vm69_vm1, %v193_v34, %v205_v39  ;;  %v210_v43 = vsel %vm69_vm1, %v205_v39, %v199_v38 }
  0x96   :  { %v212_v44 = vadd.f32 %v206_v42, %v203_v40  ;;  %v213_v45 = vadd.f32 %v210_v43, %v200_v41  ;;  %159 = vrot.lane.b32.xlu1 %v360_v37, %s331_s0  ;;  %155 = vrot.lane.b32.xlu0 %v360_v37, %s332_s13  ;;  %v158_v52 = vcombine.high %v360_v37, %v360_v37 }
  0x98   :  { %v214_v47 = vmul.f32 0.27406862, %v212_v44  ;;  %v215_v48 = vmul.f32 0.27406862, %v213_v45 }
  0x9a   :  { %v218_v49 = vcombine.low %v214_v47, %v215_v48 }
  0x9c   :  { %v369_v50 = vadd.f32 %v218_v49, %v211_v46 }
  0x9e   :  { %226 = vrot.lane.b32.xlu1 %v369_v50, %s331_s0  ;;  %222 = vrot.lane.b32.xlu0 %v369_v50, %s332_s13  ;;  %v225_v53 = vcombine.high %v369_v50, %v369_v50  ;;  %v245_v58 = vmul.f32 2.0082788, %v369_v50 }
  0xa2   :  { %99 = vrot.lane.b32.xlu1 %v89_v51, %s332_s13  ;;  %92 = vrot.lane.b32.xlu0 %v89_v51, %s331_s0  ;;  %v178_v51 = vmul.f32 2.0172446, %v360_v37 }
  0xa6   :  { %167 = vrot.lane.b32.xlu1 %v158_v52, %s332_s13  ;;  %161 = vrot.lane.b32.xlu0 %v158_v52, %s331_s0 }
  0xaa   :  { %234 = vrot.lane.b32.xlu1 %v225_v53, %s332_s13  ;;  %228 = vrot.lane.b32.xlu0 %v225_v53, %s331_s0 }
 0x104   :  { %v87_v55 = vpop.permute.xlu0 %86  ;;  %v91_v56 = vpop.permute.xlu1 %90 }
 0x105   :  { %v98_v7 = vsel %vm94_vm2, %v87_v55, %v91_v56 }
 0x108   :  { %v156_v59 = vpop.permute.xlu0 %155  ;;  %v160_v60 = vpop.permute.xlu1 %159 }
 0x109   :  { %v166_v17 = vsel %vm94_vm2, %v156_v59, %v160_v60 }
 0x110   :  { %v223_v63 = vpop.permute.xlu0 %222  ;;  %v227_v0 = vpop.permute.xlu1 %226 }
 0x111   :  { %v233_v32 = vsel %vm94_vm2, %v223_v63, %v227_v0 }
 0x114   :  { %v93_v5 = vpop.permute.xlu0 %92  ;;  %v100_v6 = vpop.permute.xlu1 %99 }
 0x115   :  { %v95_v8 = vsel %vm94_vm2, %v91_v56, %v93_v5  ;;  %v102_v9 = vsel %vm101_vm3, %v87_v55, %v100_v6  ;;  %v106_v10 = vsel %vm101_vm3, %v100_v6, %v93_v5 }
 0x116   :  { %v107_v11 = vsel %vm383_vm4, %v102_v9, %v98_v7  ;;  %v108_v12 = vsel %vm387_vm5, %v106_v10, %v95_v8  ;;  %v109_v13 = vsel %vm391_vm6, %v98_v7, %v102_v9  ;;  %v110_v14 = vsel %vm395_vm7, %v95_v8, %v106_v10 }
 0x117   :  { %v112_v15 = vadd.f32 %v109_v13, %v107_v11  ;;  %v113_v16 = vadd.f32 %v110_v14, %v108_v12 }
 0x118   :  { %v162_v18 = vpop.permute.xlu0 %161  ;;  %v168_v19 = vpop.permute.xlu1 %167 }
 0x119   :  { %v114_v20 = vmul.f32 1.1968062, %v112_v15  ;;  %v115_v21 = vmul.f32 1.1968062, %v113_v16  ;;  %v163_v22 = vsel %vm94_vm2, %v160_v60, %v162_v18  ;;  %v169_v23 = vsel %vm101_vm3, %v156_v59, %v168_v19 }
 0x11a   :  { %v173_v24 = vsel %vm101_vm3, %v168_v19, %v162_v18  ;;  %v174_v25 = vsel %vm383_vm4, %v169_v23, %v166_v17  ;;  %v176_v26 = vsel %vm391_vm6, %v166_v17, %v169_v23 }
 0x11b   :  { %v118_v27 = vcombine.low %v114_v20, %v115_v21  ;;  %v175_v28 = vsel %vm387_vm5, %v173_v24, %v163_v22  ;;  %v177_v29 = vsel %vm395_vm7, %v163_v22, %v173_v24  ;;  %v179_v30 = vadd.f32 %v176_v26, %v174_v25 }
 0x11c   :  { %v180_v33 = vadd.f32 %v177_v29, %v175_v28  ;;  %v229_v34 = vpop.permute.xlu0 %228  ;;  %v235_v35 = vpop.permute.xlu1 %234 }
 0x11d   :  { %v181_v38 = vmul.f32 1.2235206, %v179_v30  ;;  %v230_v39 = vsel %vm94_vm2, %v227_v0, %v229_v34  ;;  %v236_v40 = vsel %vm101_vm3, %v223_v63, %v235_v35  ;;  %v240_v41 = vsel %vm101_vm3, %v235_v35, %v229_v34 }
 0x11e   :  { %v182_v42 = vmul.f32 1.2235206, %v180_v33  ;;  %v241_v43 = vsel %vm383_vm4, %v236_v40, %v233_v32  ;;  %v242_v44 = vsel %vm387_vm5, %v240_v41, %v230_v39  ;;  %v243_v45 = vsel %vm391_vm6, %v233_v32, %v236_v40 }
 0x11f   :  { %v244_v31 = vsel %vm395_vm7, %v230_v39, %v240_v41  ;;  %v246_v46 = vadd.f32 %v243_v45, %v241_v43  ;;  %v120_v47 = vadd.f32 %v118_v27, %v111_v36 }
 0x120   :  { %v185_v48 = vcombine.low %v181_v38, %v182_v42  ;;  %v247_v49 = vadd.f32 %v244_v31, %v242_v44 }
 0x121   :  { %v248_v52 = vmul.f32 1.2180828, %v246_v46  ;;  %v272_v53 = vadd.f32 -2.117904, %v120_v47 }
 0x122   :  { %v249_v54 = vmul.f32 1.2180828, %v247_v49  ;;  %v187_v55 = vadd.f32 %v185_v48, %v178_v51 }
 0x123   :  { %122 = vst [vmem:[#allocation5] sm:$0xff] %v272_v53 }
 0x124   :  { %v252_v56 = vcombine.low %v248_v52, %v249_v54  ;;  %v273_v57 = vadd.f32 -2.0357144, %v187_v55 }
 0x126   :  { %189 = vst [vmem:[#allocation5 + $0x8] sm:$0xff] %v273_v57  ;;  %v254_v59 = vadd.f32 %v252_v56, %v245_v58 }
 0x128   :  { %v274_v60 = vadd.f32 -1.8044444, %v254_v59 }
 0x12a   :  { %256 = vst [vmem:[#allocation5 + $0x10] sm:$0xff] %v274_v60 }
 0x12b   :  { %315 = shalt.err (!%p312_p9)
}
 0x12c   :  { %266 = dma.vmem_to_hbm [thread:$0]  %s264_s15, 384, %s442_s1, [#allocation4]  }
 0x12d   :  { %326 = dma.done.wait [#allocation4], 384  }
 0x12e   :  { %327 = vsyncadd [#allocation4], 4294966912 }
 0x12f   :  { %270 = vsyncpa [#allocation3], 1 }
 0x130   :  { %271 = vsyncpa [#allocation4], 1 }

</bundles_post_ra>
